<compile_context>
chip_gen: v5e
topology: v5e:2x2
jax: 0.10.0
libtpu: 0.0.40
codegen_flags: <defaults>
</compile_context>

<pallas_src>
import functools

import jax
import jax.numpy as jnp
from jax import lax
from jax.experimental import pallas as pl
from jax.experimental.pallas import tpu as pltpu

_NEG_LARGE = -1e30  # finite "-inf": avoids NaN on fully-masked rows


def _round_up(x, m):
    return ((x + m - 1) // m) * m


def _cdiv(a, b):
    return -(-a // b)


# --------------------------------------------------------------------------
# Kernel
# --------------------------------------------------------------------------
def _sdpa_kernel(*refs, scale, has_mask, lk_valid, lk_pad, need_attn):
    idx = 0
    q_ref, k_ref, v_ref = refs[0], refs[1], refs[2]
    idx = 3
    m_ref = None
    if has_mask:
        m_ref = refs[idx]
        idx += 1
    attn_ref = None
    if need_attn:
        attn_ref = refs[idx]
        idx += 1
    out_ref = refs[idx]

    # Fold 1/scale into q: touches Lq*D elements instead of the Lq*Lk logits.
    q = q_ref[...] * jnp.asarray(1.0 / scale, dtype=q_ref.dtype)
    k = k_ref[...]
    v = v_ref[...]

    # u = (q/scale) @ k^T: batched MXU matmul contracting on D of both operands
    # (no explicit k transpose -> no XLU work), f32 accumulation.
    u = lax.dot_general(
        q, k,
        dimension_numbers=(((2,), (2,)), ((0,), (0,))),
        preferred_element_type=jnp.float32,
    )  # (TB, TQ, Lk_pad)

    if has_mask:
        # Mask block may have batch-dim 1 (broadcast mask); jnp.where broadcasts.
        u = jnp.where(m_ref[...] != 0, _NEG_LARGE, u)
    if lk_pad > lk_valid:
        # Mask the zero-padded key columns (static, only traced when needed).
        col = lax.broadcasted_iota(jnp.int32, u.shape, dimension=2)
        u = jnp.where(col >= lk_valid, _NEG_LARGE, u)

    # Online-free softmax over the key axis, internal math in f32.
    u_max = jnp.max(u, axis=-1, keepdims=True)
    e = jnp.exp(u - u_max)
    denom = jnp.sum(e, axis=-1, keepdims=True)
    recip = pl.reciprocal(denom, approx=True)  # EUP reciprocal (free slot)

    # PV matmul on the UNNORMALIZED probabilities so it can issue as soon as
    # exp finishes (overlaps the XLU sum / EUP reciprocal); the normalization
    # is folded into the small (TQ, Dv) f32 result afterwards.  Probabilities
    # are cast to v's dtype so bf16 inputs run the MXU natively.
    out = lax.dot_general(
        e.astype(v_ref.dtype), v,
        dimension_numbers=(((2,), (1,)), ((0,), (0,))),
        preferred_element_type=jnp.float32,
    )  # (TB, TQ, Dv)
    out = out * recip

    if need_attn:
        attn_ref[...] = (e * recip).astype(attn_ref.dtype)
    out_ref[...] = out.astype(out_ref.dtype)


# --------------------------------------------------------------------------
# Hardware policy / tiling
# --------------------------------------------------------------------------
def _hw_policy():
    """Returns (vmem_tile_budget, vmem_limit_bytes, preferred_TQ)."""
    vmem_cap = None
    try:
        vmem_cap = int(pltpu.get_tpu_info().vmem_capacity_bytes)
    except Exception:
        vmem_cap = None
    kind = ""
    try:
        kind = jax.devices()[0].device_kind.lower()
    except Exception:
        pass
    if vmem_cap is None:
        # Conservative fallback: assume 64 MiB (v7x) unless the device kind
        # clearly indicates a 128 MiB-VMEM generation.
        vmem_cap = (128 << 20) if ("v5" in kind or "v6" in kind) else (64 << 20)

    if vmem_cap >= (100 << 20):      # v5e / v6e: 128 MiB per core
        budget, vmem_limit = 64 << 20, 96 << 20
    else:                            # v7x: 64 MiB per core
        budget, vmem_limit = 24 << 20, 48 << 20

    is_v5e = ("v5 lite" in kind) or ("v5e" in kind) or ("v5litepod" in kind)
    prefer_tq = 128 if is_v5e else 256   # v5e MXUs are 128-wide
    return budget, vmem_limit, prefer_tq


def _pick_tiles(B, Lq_pad8, Lk_pad, D, Dv, itemsize, attn_itemsize,
                mask_mode, need_attn, budget, prefer_tq):
    TQ = prefer_tq if Lq_pad8 >= prefer_tq else Lq_pad8

    def est(tb, tq):
        mask_batches = 0 if mask_mode == "none" else (1 if mask_mode == "bcast" else tb)
        # Double-buffered pipeline blocks (inputs + outputs).
        bytes_in = 2 * tb * (tq * D + Lk_pad * (D + Dv)) * itemsize
        bytes_in += 2 * mask_batches * tq * Lk_pad          # int8 mask
        bytes_out = 2 * tb * tq * Dv * itemsize
        if need_attn:
            bytes_out += 2 * tb * tq * Lk_pad * attn_itemsize
        # f32 logits / exp / normalized-probs intermediates.
        scratch = 3 * tb * tq * Lk_pad * 4
        return bytes_in + bytes_out + scratch

    # No hard TB cap: the VMEM budget alone decides how many batches share a
    # grid step (amortizes the ~0.35us/step overhead at small L).
    TB = max(B, 1)
    while TB > 1 and est(TB, TQ) > budget:
        TB -= 1
    # Long-Lk fallback (e.g. v7x's 64 MiB VMEM): shrink the query tile.
    # TODO(synk): add key-axis (online-softmax) tiling for extreme Lk where
    # even TQ=32 at TB=1 cannot fit the resident K/V + f32 logits.
    while TB == 1 and TQ > 32 and est(1, TQ) > budget:
        TQ = max(32, _round_up(TQ // 2, 8))

    # Megacore: guarantee >= 2 steps along a parallel grid axis so both
    # TensorCores of a v7x chip get work.
    b_blocks = _cdiv(B, TB)
    q_blocks = _cdiv(Lq_pad8, TQ)
    if b_blocks == 1 and q_blocks == 1:
        if TB >= 2:
            TB = (TB + 1) // 2
        elif TQ >= 256:
            TQ //= 2
    return TB, TQ


def _pad_to(x, shape):
    pads = [(0, t - s) for t, s in zip(shape, x.shape)]
    if all(p == (0, 0) for p in pads):
        return x
    return jnp.pad(x, pads)


# --------------------------------------------------------------------------
# Wrapper
# --------------------------------------------------------------------------
def scale_dot_product_attention(q, k, v, scale, mask=None, need_attn=True):
    """q: (B, Lq, D), k: (B, Lk, D), v: (B, Lk, Dv).

    Returns (attn, output); with need_attn=False, returns only output
    (flash-style: skips the dominant (B, Lq, Lk) attn HBM writeback).
    """
    B, Lq, D = q.shape
    _, Lk, Dv = v.shape

    # Pad keys to a lane-dense multiple of 128 (attn's last dim) and queries to
    # a multiple of 8 so any Lq tiling satisfies the (8, 128) block rule.
    Lk_pad = _round_up(Lk, 128)
    Lq_pad8 = _round_up(Lq, 8)

    # Normalize the mask: 2-D or batch-dim-1 masks stay batch-broadcast (no
    # dense B x Lq x Lk materialization / DMA).
    mask_mode = "none"
    if mask is not None:
        mask = jnp.asarray(mask)
        if mask.ndim == 2:
            mask = mask[None]
        mask = jnp.broadcast_to(mask, (mask.shape[0], Lq, Lk))
        if mask.shape[0] == 1:
            mask_mode = "bcast"
        else:
            mask_mode = "dense"
            if mask.shape[0] != B:
                mask = jnp.broadcast_to(mask, (B, Lq, Lk))

    attn_dtype = q.dtype  # torch softmax returns the input dtype
    out_dtype = v.dtype

    budget, vmem_limit, prefer_tq = _hw_policy()
    TB, TQ = _pick_tiles(
        B, Lq_pad8, Lk_pad, D, Dv,
        jnp.dtype(q.dtype).itemsize, jnp.dtype(attn_dtype).itemsize,
        mask_mode, need_attn, budget, prefer_tq)

    Lq_pad = _round_up(Lq_pad8, TQ)
    B_pad = _round_up(B, TB)

    q_p = _pad_to(q, (B_pad, Lq_pad, D))
    k_p = _pad_to(k, (B_pad, Lk_pad, D))
    v_p = _pad_to(v, (B_pad, Lk_pad, Dv))

    inputs = [q_p, k_p, v_p]
    in_specs = [
        pl.BlockSpec((TB, TQ, D), lambda b, i: (b, i, 0)),
        pl.BlockSpec((TB, Lk_pad, D), lambda b, i: (b, 0, 0)),   # K resident across q tiles
        pl.BlockSpec((TB, Lk_pad, Dv), lambda b, i: (b, 0, 0)),  # V resident across q tiles
    ]
    if mask_mode == "bcast":
        m_p = _pad_to(mask.astype(jnp.int8), (1, Lq_pad, Lk_pad))
        inputs.append(m_p)
        in_specs.append(pl.BlockSpec((1, TQ, Lk_pad), lambda b, i: (0, i, 0)))
    elif mask_mode == "dense":
        m_p = _pad_to(mask.astype(jnp.int8), (B_pad, Lq_pad, Lk_pad))
        inputs.append(m_p)
        in_specs.append(pl.BlockSpec((TB, TQ, Lk_pad), lambda b, i: (b, i, 0)))

    out_shape = []
    out_specs = []
    if need_attn:
        out_shape.append(jax.ShapeDtypeStruct((B_pad, Lq_pad, Lk_pad), attn_dtype))
        out_specs.append(pl.BlockSpec((TB, TQ, Lk_pad), lambda b, i: (b, i, 0)))
    out_shape.append(jax.ShapeDtypeStruct((B_pad, Lq_pad, Dv), out_dtype))
    out_specs.append(pl.BlockSpec((TB, TQ, Dv), lambda b, i: (b, i, 0)))

    kernel = functools.partial(
        _sdpa_kernel, scale=float(scale), has_mask=(mask_mode != "none"),
        lk_valid=Lk, lk_pad=Lk_pad, need_attn=need_attn)

    results = pl.pallas_call(
        kernel,
        out_shape=tuple(out_shape),
        grid_spec=pltpu.PrefetchScalarGridSpec(
            num_scalar_prefetch=0,
            grid=(B_pad // TB, Lq_pad // TQ),
            in_specs=in_specs,
            out_specs=out_specs,
        ),
        compiler_params=pltpu.CompilerParams(
            dimension_semantics=("parallel", "parallel"),
            vmem_limit_bytes=vmem_limit,
        ),
    )(*inputs)

    if need_attn:
        attn_p, out_p = results
        return attn_p[:B, :Lq, :Lk], out_p[:B, :Lq, :]
    out_p = results[0]
    return out_p[:B, :Lq, :]


# --------------------------------------------------------------------------
# Reference + test
# --------------------------------------------------------------------------
def _reference(q, k, v, scale, mask=None):
    u = jnp.einsum("bqd,bkd->bqk", q, k) / scale
    if mask is not None:
        u = jnp.where(mask, -jnp.inf, u)
    attn = jax.nn.softmax(u, axis=2)
    out = jnp.einsum("bqk,bkd->bqd", attn, v)
    return attn, out


if __name__ == "__main__":
    key = jax.random.PRNGKey(0)
    kq, kk, kv = jax.random.split(key, 3)

    B, Lq, Lk, D, Dv = 2, 8, 8, 32, 32
    scale = float(D) ** 0.5

    q = jax.random.normal(kq, (B, Lq, D), dtype=jnp.float32)
    k = jax.random.normal(kk, (B, Lk, D), dtype=jnp.float32)
    v = jax.random.normal(kv, (B, Lk, Dv), dtype=jnp.float32)

    # Deterministic causal mask (True = masked); no row is fully masked.
    causal = jnp.arange(Lk)[None, :] > jnp.arange(Lq)[:, None]   # (Lq, Lk)
    mask_dense = jnp.broadcast_to(causal, (B, Lq, Lk))

    # 1) Unmasked path (mask-free kernel variant).
    attn, out = scale_dot_product_attention(q, k, v, scale, mask=None)
    jax.block_until_ready((attn, out))
    attn_r, out_r = _reference(q, k, v, scale, mask=None)
    assert attn.dtype == q.dtype and out.dtype == v.dtype
    assert attn.shape == (B, Lq, Lk) and out.shape == (B, Lq, Dv)
    assert jnp.allclose(attn, attn_r, atol=5e-3, rtol=5e-3)
    assert jnp.allclose(out, out_r, atol=5e-3, rtol=5e-3)

    # 2) Dense per-batch mask.
    attn_m, out_m = scale_dot_product_attention(q, k, v, scale, mask=mask_dense)
    jax.block_until_ready((attn_m, out_m))
    attn_mr, out_mr = _reference(q, k, v, scale, mask=mask_dense)
    assert jnp.allclose(attn_m, attn_mr, atol=5e-3, rtol=5e-3)
    assert jnp.allclose(out_m, out_mr, atol=5e-3, rtol=5e-3)

    # 3) Broadcast (2-D) mask — exercises the batch-broadcast mask path
    #    (no dense B x Lq x Lk mask DMA).
    attn_b, out_b = scale_dot_product_attention(q, k, v, scale, mask=causal)
    jax.block_until_ready((attn_b, out_b))
    assert jnp.allclose(attn_b, attn_mr, atol=5e-3, rtol=5e-3)
    assert jnp.allclose(out_b, out_mr, atol=5e-3, rtol=5e-3)

    # 4) Output-only (flash-style) variant: skips the attn writeback.
    out_only = scale_dot_product_attention(q, k, v, scale, mask=mask_dense,
                                           need_attn=False)
    jax.block_until_ready(out_only)
    assert jnp.allclose(out_only, out_mr, atol=5e-3, rtol=5e-3)

    print("KERNEL_OK")
</pallas_src>

<mosaic_0001>
module attributes {stable_mosaic.version = 11 : i64} {
  func.func @_sdpa_kernel(%arg0: i32, %arg1: i32, %arg2: memref<1x8x32xf32, #tpu.memory_space<vmem>>, %arg3: memref<1x128x32xf32, #tpu.memory_space<vmem>>, %arg4: memref<1x128x32xf32, #tpu.memory_space<vmem>>, %arg5: memref<1x8x128xf32, #tpu.memory_space<vmem>>, %arg6: memref<1x8x32xf32, #tpu.memory_space<vmem>>) attributes {dimension_semantics = [#tpu.dimension_semantics<parallel>, #tpu.dimension_semantics<parallel>], iteration_bounds = array<i64: 2, 1>, scalar_prefetch = 0 : i64, scratch_operands = 0 : i64, tpu.core_type = #tpu.core_type<tc>, window_params = [{transform_indices = @transform_0, window_bounds = array<i64: 1, 8, 32>}, {transform_indices = @transform_1, window_bounds = array<i64: 1, 128, 32>}, {transform_indices = @transform_2, window_bounds = array<i64: 1, 128, 32>}, {transform_indices = @transform_3, window_bounds = array<i64: 1, 8, 128>}, {transform_indices = @transform_4, window_bounds = array<i64: 1, 8, 32>}]} {
    %c0 = arith.constant 0 : index
    %c0_0 = arith.constant 0 : index
    %c0_1 = arith.constant 0 : index
    %0 = vector.load %arg2[%c0, %c0_0, %c0_1] : memref<1x8x32xf32, #tpu.memory_space<vmem>>, vector<1x8x32xf32>
    %cst = arith.constant 0.176776692 : f32
    %1 = vector.broadcast %cst : f32 to vector<1x8x32xf32>
    %2 = arith.mulf %0, %1 : vector<1x8x32xf32>
    %c0_2 = arith.constant 0 : index
    %c0_3 = arith.constant 0 : index
    %c0_4 = arith.constant 0 : index
    %3 = vector.load %arg3[%c0_2, %c0_3, %c0_4] : memref<1x128x32xf32, #tpu.memory_space<vmem>>, vector<1x128x32xf32>
    %c0_5 = arith.constant 0 : index
    %c0_6 = arith.constant 0 : index
    %c0_7 = arith.constant 0 : index
    %4 = vector.load %arg4[%c0_5, %c0_6, %c0_7] : memref<1x128x32xf32, #tpu.memory_space<vmem>>, vector<1x128x32xf32>
    %cst_8 = arith.constant dense<0.000000e+00> : vector<1x8x128xf32>
    %5 = tpu.matmul %2, %3, %cst_8 {dimension_numbers = #tpu.dot_dimension_numbers<[2], [2], [1], [1], [0, 0, 0, 1, 1, 1], [0], [0]>} : vector<1x8x32xf32>, vector<1x128x32xf32>, vector<1x8x128xf32> -> vector<1x8x128xf32>
    %6 = tpu.iota {dimensions = array<i32: 2>} : vector<1x8x128xi32>
    %c8_i32 = arith.constant 8 : i32
    %7 = vector.broadcast %c8_i32 : i32 to vector<1x8x128xi32>
    %8 = arith.cmpi sge, %6, %7 : vector<1x8x128xi32>
    %cst_9 = arith.constant -1.000000e+30 : f32
    %9 = vector.broadcast %cst_9 : f32 to vector<1x8x128xf32>
    %10 = arith.select %8, %9, %5 : vector<1x8x128xi1>, vector<1x8x128xf32>
    %cst_10 = arith.constant dense<0xFF800000> : vector<1x8xf32>
    %11 = vector.multi_reduction <maximumf>, %10, %cst_10 [2] : vector<1x8x128xf32> to vector<1x8xf32>
    %12 = vector.shape_cast %11 : vector<1x8xf32> to vector<1x8x1xf32>
    %13 = vector.broadcast %12 : vector<1x8x1xf32> to vector<1x8x128xf32>
    %14 = arith.subf %10, %13 : vector<1x8x128xf32>
    %15 = math.exp %14 : vector<1x8x128xf32>
    %cst_11 = arith.constant dense<0.000000e+00> : vector<1x8xf32>
    %16 = vector.multi_reduction <add>, %15, %cst_11 [2] : vector<1x8x128xf32> to vector<1x8xf32>
    %17 = vector.shape_cast %16 : vector<1x8xf32> to vector<1x8x1xf32>
    %18 = tpu.reciprocal %17 {approx = true} : vector<1x8x1xf32> -> vector<1x8x1xf32>
    %cst_12 = arith.constant dense<0.000000e+00> : vector<1x8x32xf32>
    %19 = tpu.matmul %15, %4, %cst_12 {dimension_numbers = #tpu.dot_dimension_numbers<[2], [1], [1], [2], [0, 0, 0, 1, 1, 2], [0], [0]>} : vector<1x8x128xf32>, vector<1x128x32xf32>, vector<1x8x32xf32> -> vector<1x8x32xf32>
    %20 = vector.broadcast %18 : vector<1x8x1xf32> to vector<1x8x32xf32>
    %21 = arith.mulf %19, %20 : vector<1x8x32xf32>
    %22 = vector.broadcast %18 : vector<1x8x1xf32> to vector<1x8x128xf32>
    %23 = arith.mulf %15, %22 : vector<1x8x128xf32>
    %c0_13 = arith.constant 0 : index
    %c0_14 = arith.constant 0 : index
    %c0_15 = arith.constant 0 : index
    %24 = vector.load %arg5[%c0_13, %c0_14, %c0_15] : memref<1x8x128xf32, #tpu.memory_space<vmem>>, vector<1x8x128xf32>
    tpu.vector_store %arg5[%c0_13, %c0_14, %c0_15], %23 {strides = array<i32>} : memref<1x8x128xf32, #tpu.memory_space<vmem>>, vector<1x8x128xf32>,
    %c0_16 = arith.constant 0 : index
    %c0_17 = arith.constant 0 : index
    %c0_18 = arith.constant 0 : index
    %25 = vector.load %arg6[%c0_16, %c0_17, %c0_18] : memref<1x8x32xf32, #tpu.memory_space<vmem>>, vector<1x8x32xf32>
    tpu.vector_store %arg6[%c0_16, %c0_17, %c0_18], %21 {strides = array<i32>} : memref<1x8x32xf32, #tpu.memory_space<vmem>>, vector<1x8x32xf32>,
    return
  }
  func.func @transform_0(%arg0: i32, %arg1: i32) -> (i32, i32, i32) {
    %c0_i32 = arith.constant 0 : i32
    %c0_i32_0 = arith.constant 0 : i32
    return %arg0, %arg1, %c0_i32 : i32, i32, i32
  }
  func.func @transform_1(%arg0: i32, %arg1: i32) -> (i32, i32, i32) {
    %c0_i32 = arith.constant 0 : i32
    %c0_i32_0 = arith.constant 0 : i32
    %c0_i32_1 = arith.constant 0 : i32
    return %arg0, %c0_i32, %c0_i32_0 : i32, i32, i32
  }
  func.func @transform_2(%arg0: i32, %arg1: i32) -> (i32, i32, i32) {
    %c0_i32 = arith.constant 0 : i32
    %c0_i32_0 = arith.constant 0 : i32
    %c0_i32_1 = arith.constant 0 : i32
    return %arg0, %c0_i32, %c0_i32_0 : i32, i32, i32
  }
  func.func @transform_3(%arg0: i32, %arg1: i32) -> (i32, i32, i32) {
    %c0_i32 = arith.constant 0 : i32
    %c0_i32_0 = arith.constant 0 : i32
    return %arg0, %arg1, %c0_i32 : i32, i32, i32
  }
  func.func @transform_4(%arg0: i32, %arg1: i32) -> (i32, i32, i32) {
    %c0_i32 = arith.constant 0 : i32
    %c0_i32_0 = arith.constant 0 : i32
    return %arg0, %arg1, %c0_i32 : i32, i32, i32
  }
}

</mosaic_0001>

<bundles_post_ra>
// kernel: tpu_custom_call.1
= control target key start
LH: loop header
LB: loop body
LE: loop exit
PB: predicated region body
PF: predicated region fallthrough
CT: control target
= control target key end

     0   :  { %10 = vsyncpa [#allocation3], 0  ;;  %s1007_s0 = inlined_call_operand.vmem [shape: f32[2,8,32], index: 0, kind: input, shape index: {}]   ;;  %s1008_s1 = inlined_call_operand.vmem [shape: f32[2,128,32], index: 1, kind: input, shape index: {}]   ;;  %s1009_s2 = inlined_call_operand.vmem [shape: f32[2,128,32], index: 2, kind: input, shape index: {}]   ;;  %s1010_s3 = inlined_call_operand.hbm [shape: f32[2,8,128], index: 3, kind: output, shape index: {0}]   ;;  %s1011_s4 = inlined_call_operand.hbm [shape: f32[2,8,32], index: 4, kind: output, shape index: {1}]  }
   0x1   :  { %12 = vsyncpa [#allocation3 + $0x1], 0 }
   0x2   :  { %13 = vsyncpa [#allocation5], 0 }
   0x3   :  { %15 = vsyncpa [#allocation5 + $0x1], 0  ;;  %s817_s15 = smov 0   ;;  %s819_s16 = smov 0  }
   0x4   :  { %s821_s17 = smov 0   ;;  %s823_s18 = smov 0  }
   0x5   :  { %s825_s19 = smov 0   ;;  %s827_s20 = smov 0  }
   0x6 LB: > { %s579_s21 = sadd.s32 4294967295, %s790_s20   ;;  %s580_s22 = sadd.s32 4294967294, %s790_s20   ;;  %s790_s20 = sphi %s827_s20, %s21_s20   ;;  %s786_s19 = sphi %s825_s19, %s1018_s19   ;;  %s782_s18 = sphi %s823_s18, %s1017_s18   ;;  %s778_s17 = sphi %s821_s17, %s1016_s17   ;;  %s774_s16 = sphi %s819_s16, %s1015_s16   ;;  %s770_s15 = sphi %s817_s15, %s1014_s15  }
   0x7   : > { %s33_s23 = sadd.s32 1, %s786_s19  ;;  %s122_s24 = sadd.s32 1, %s778_s17 }
   0x8   : > { %p35_p0 = scmp.ge.s32.totalorder %s33_s23, 2  ;;  %p132_p1 = scmp.ne.s32.totalorder %s778_s17, %s774_s16 }
   0x9   : > { %p133_p2 = scmp.eq.s32.totalorder %s579_s21, 1  ;;  %p138_p3 = scmp.ne.s32.totalorder %s774_s16, %s770_s15 }
   0xa   : > { %s1020_s23 = smov (%p35_p0, %s33_s23), 0  ;;  %p139_p5 = scmp.eq.s32.totalorder %s580_s22, 1 }
   0xb   : > { %p857_p4 = por %p133_p2, %p132_p1  ;;  %s117_s26 = ssub.s32 %s786_s19, %s1020_s23 }
   0xc   : > { %p583_p6 = scmp.ge.s32.totalorder %s790_s20, 1  ;;  %p120_p7 = scmp.eq.s32.totalorder %s117_s26, 0 }
   0xd   : > { %p864_p8 = por %p139_p5, %p138_p3  ;;  %p211_p9 = scmp.lt.s32.totalorder %s790_s20, 3 }
   0xe   : > { %s870_s28 = scalar_select %p120_p7, %s778_s17, %s122_s24  }
   0xf   : > { %p212_p10 = pnand %p583_p6, %p211_p9 }
  0x10   : > { %p254_p11 = scmp.lt.s32.totalorder (!%p212_p10), %s782_s18, 1  ;;  %s945_s21 = sand.u32 (!%p212_p10), 1, %s774_s16  }
  0x11   : > { %215 = sbr.rel (%p212_p10) target bundleno = 485 (0x1e5), region = 32  ;;  %s610_s22 = sshll.u32 (!%p212_p10), %s782_s18, 3 }
  0x12   : > { %s584_s24 = sshll.u32 (!%p212_p10), %s945_s21, 3  ;;  %s414_s13 = scalar_lea.sflag (!%p212_p10), [#allocation3], %s945_s21 }
  0x16   : > { %s874_s29 = scalar_select %p254_p11, %s782_s18, 1  ;;  %vm305_vm0 = vcmask 261120   ;;  %v377_v28 = vlaneseq }
  0x18   : > { %s614_s30 = sshll.u32 %s874_s29, 7  ;;  %s586_s8 = sshll.u32 %s874_s29, 3  ;;  %v378_v29 = vand.u32 127, %v377_v28 }
  0x19   : > { %s882_s7 = scalar_lea.vmem %s1008_s1, %s614_s30  ;;  %s260_s11 = scalar_lea.vmem %s1007_s0, %s586_s8 }
  0x1a   : > { %v288_v0 = vld [vmem:[%s882_s7 + $0x78] sm:$0xff]  ;;  %v287_v1 = vld [vmem:[%s882_s7 + $0x70] sm:$0xff]  ;;  %v286_v2 = vld [vmem:[%s882_s7 + $0x68] sm:$0xff]  ;;  %s926_s14 = scalar_lea.vmem %s1009_s2, %s614_s30  ;;  %vm379_vm1 = vcmp.ge.s32.totalorder %v378_v29, 8  ;;  %s430_s30 = scalar_lea.hbm %s1010_s3, %s610_s22 }
  0x1b   : > { %591 = vmatpush.xpose.msk.msra.mxu0 %vm305_vm0, %v288_v0  ;;  %v285_v3 = vld [vmem:[%s882_s7 + $0x60] sm:$0xff]  ;;  %v284_v4 = vld [vmem:[%s882_s7 + $0x58] sm:$0xff]  ;;  %v283_v5 = vld [vmem:[%s882_s7 + $0x50] sm:$0xff]  ;;  %s246_s8 = scalar_lea.vmem [#allocation2], %s584_s24  ;;  %s434_s10 = sshll.u32 %s430_s30, 4  ;;  %s435_s10 = int_to_ptr.hbm [resolvable:$true] %s434_s10 }
  0x1c   : > { %v282_v6 = vld [vmem:[%s882_s7 + $0x48] sm:$0xff]  ;;  %v281_v7 = vld [vmem:[%s882_s7 + $0x40] sm:$0xff]  ;;  %v280_v8 = vld [vmem:[%s882_s7 + $0x38] sm:$0xff]  ;;  %s432_s9 = sshll.u32 %s246_s8, 4  ;;  %s700_s29 = scalar_lea.hbm %s1010_s3, 16  ;;  %s433_s9 = int_to_ptr.vmem [resolvable:$true] %s432_s9 }
  0x1d   : > { %v279_v9 = vld [vmem:[%s882_s7 + $0x30] sm:$0xff]  ;;  %v278_v10 = vld [vmem:[%s882_s7 + $0x28] sm:$0xff]  ;;  %v277_v11 = vld [vmem:[%s882_s7 + $0x20] sm:$0xff] }
  0x1e   : > { %v276_v12 = vld [vmem:[%s882_s7 + $0x18] sm:$0xff]  ;;  %v275_v13 = vld [vmem:[%s882_s7 + $0x10] sm:$0xff]  ;;  %v274_v14 = vld [vmem:[%s882_s7 + $0x8] sm:$0xff] }
  0x1f   : > { %592 = vmatpush.xpose.msk.msra.mxu0 %vm305_vm0, %v287_v1  ;;  %v271_v15 = vld [vmem:[%s260_s11] sm:$0xff]  ;;  %v304_v18 = vld [vmem:[%s926_s14 + $0x78] sm:$0xff]  ;;  %v303_v19 = vld [vmem:[%s926_s14 + $0x70] sm:$0xff]  ;;  %s253_s11 = scalar_lea.vmem [#allocation4], %s584_s24 }
  0x20   : > { %v273_v16 = vld [vmem:[%s882_s7] sm:$0xff]  ;;  %v272_v17 = vmul.f32 0.17677669, %v271_v15  ;;  %389 = vmatpush.msra.mxu1 %v304_v18  ;;  %v302_v20 = vld [vmem:[%s926_s14 + $0x68] sm:$0xff]  ;;  %v300_v22 = vld [vmem:[%s926_s14 + $0x58] sm:$0xff]  ;;  %s445_s7 = scalar_lea.hbm %s1011_s4, %s610_s22  ;;  %s447_s12 = sshll.u32 %s253_s11, 4  ;;  %s955_s12 = int_to_ptr.vmem [resolvable:$true] %s447_s12 }
  0x21   : > { %v301_v21 = vld [vmem:[%s926_s14 + $0x60] sm:$0xff]  ;;  %v299_v23 = vld [vmem:[%s926_s14 + $0x50] sm:$0xff]  ;;  %v298_v24 = vld [vmem:[%s926_s14 + $0x48] sm:$0xff]  ;;  %s449_s18 = sshll.u32 %s445_s7, 4  ;;  %s957_s18 = int_to_ptr.hbm [resolvable:$true] %s449_s18 }
  0x22   : > { %390 = vmatpush.msra.mxu1 %v303_v19  ;;  %v297_v25 = vld [vmem:[%s926_s14 + $0x40] sm:$0xff]  ;;  %v296_v26 = vld [vmem:[%s926_s14 + $0x38] sm:$0xff]  ;;  %v295_v27 = vld [vmem:[%s926_s14 + $0x30] sm:$0xff] }
  0x23   : > { %593 = vmatpush.xpose.msk.msra.mxu0 %vm305_vm0, %v286_v2  ;;  %v294_v32 = vld [vmem:[%s926_s14 + $0x28] sm:$0xff]  ;;  %v293_v33 = vld [vmem:[%s926_s14 + $0x20] sm:$0xff]  ;;  %v292_v34 = vld [vmem:[%s926_s14 + $0x18] sm:$0xff] }
  0x24   : > { %391 = vmatpush.msra.mxu1 %v302_v20  ;;  %v291_v35 = vld [vmem:[%s926_s14 + $0x10] sm:$0xff]  ;;  %v290_v36 = vld [vmem:[%s926_s14 + $0x8] sm:$0xff]  ;;  %v289_v37 = vld [vmem:[%s926_s14] sm:$0xff]  ;;  %s694_s14 = sshra.s32 %s435_s10, 4  ;;  %s695_s14 = int_to_ptr.hbm [resolvable:$true] %s694_s14 }
  0x25   : > { %s696_s22 = scalar_lea.hbm %s695_s14, 8  ;;  %p701_p1 = scmp.lt.s32.totalorder %s695_s14, %s1010_s3 }
  0x26   : > { %392 = vmatpush.msra.mxu1 %v301_v21  ;;  %p697_p12 = scmp.ne.s32.totalorder %s695_s14, %s696_s22  ;;  %p702_p2 = scmp.lt.s32.totalorder %s700_s29, %s696_s22 }
  0x27   : > { %594 = vmatpush.xpose.msk.msra.mxu0 %vm305_vm0, %v285_v3 }
  0x28   : > { %393 = vmatpush.msra.mxu1 %v300_v22  ;;  %p698_p13 = pnand %p697_p12, %p857_p4  ;;  %p703_p3 = por %p702_p2, %p701_p1 }
  0x2a   : > { %394 = vmatpush.msra.mxu1 %v299_v23  ;;  %p699_p0 = pneg %p698_p13 }
  0x2b   : > { %595 = vmatpush.xpose.msk.msra.mxu0 %vm305_vm0, %v284_v4 }
  0x2c   : > { %395 = vmatpush.msra.mxu1 %v298_v24  ;;  %p704_p5 = pnand %p703_p3, %p699_p0 }
  0x2e   : > { %396 = vmatpush.msra.mxu1 %v297_v25 }
  0x2f   : > { %596 = vmatpush.xpose.msk.msra.mxu0 %vm305_vm0, %v283_v5 }
  0x30   : > { %397 = vmatpush.msra.mxu1 %v296_v26 }
  0x32   : > { %398 = vmatpush.msra.mxu1 %v295_v27 }
  0x33   : > { %597 = vmatpush.xpose.msk.msra.mxu0 %vm305_vm0, %v282_v6 }
  0x34   : > { %399 = vmatpush.msra.mxu1 %v294_v32 }
  0x36   : > { %400 = vmatpush.msra.mxu1 %v293_v33 }
  0x37   : > { %598 = vmatpush.xpose.msk.msra.mxu0 %vm305_vm0, %v281_v7 }
  0x38   : > { %401 = vmatpush.msra.mxu1 %v292_v34 }
  0x3a   : > { %402 = vmatpush.msra.mxu1 %v291_v35 }
  0x3b   : > { %599 = vmatpush.xpose.msk.msra.mxu0 %vm305_vm0, %v280_v8 }
  0x3c   : > { %403 = vmatpush.msra.mxu1 %v290_v36 }
  0x3e   : > { %404 = vmatpush.msra.mxu1 %v289_v37 }
  0x3f   : > { %600 = vmatpush.xpose.msk.msra.mxu0 %vm305_vm0, %v279_v9 }
  0x43   : > { %601 = vmatpush.xpose.msk.msra.mxu0 %vm305_vm0, %v278_v10 }
  0x47   : > { %602 = vmatpush.xpose.msk.msra.mxu0 %vm305_vm0, %v277_v11 }
  0x4b   : > { %603 = vmatpush.xpose.msk.msra.mxu0 %vm305_vm0, %v276_v12 }
  0x4f   : > { %604 = vmatpush.xpose.msk.msra.mxu0 %vm305_vm0, %v275_v13 }
  0x53   : > { %605 = vmatpush.xpose.msk.msra.mxu0 %vm305_vm0, %v274_v14 }
  0x57   : > { %606 = vmatpush.xpose.msk.msra.mxu0 %vm305_vm0, %v273_v16 }
  0x5a   : > { %607 = vmatmul.msk.f32.vlgmr.msra.gmra.mxu0 %vm305_vm0, %v272_v17 }
  0xd7   : > { %v374_v30 = vpop.f32.mrf.mxu0 }
  0xd8   : > { %v380_v31 = vsel %vm379_vm1, -1e+30, %v374_v30 }
  0xd9   : > { %381 = vmax.xlane.f32.xlu0 %v380_v31 }
 0x14c   : > { %v382_v38 = vpop.xlane.xlu0 %381 }
 0x14d   : > { %v383_v39 = vsub.f32 %v380_v31, %v382_v38 }
 0x14f   : > { %v384_v40 = vmul.f32 1.442695, %v383_v39 }
 0x151   : > { %676 = vpow2.f32 %v384_v40 }
 0x157   : > { %v677_v41 = vpop.eup %676 }
 0x158   : > { %386 = vadd.xlane.f32.xlu0 %v677_v41  ;;  %405 = vmatmul.f32.vlgmr.msra.gmra.mxu1 %v677_v41 }
 0x1cb   : > { %v387_v42 = vpop.xlane.xlu0 %386 }
 0x1cc   : > { %678 = vrcp.f32 %v387_v42 }
 0x1d2   : > { %v679_v43 = vpop.eup %678 }
 0x1d3   : > { %v410_v44 = vmul.f32 %v679_v43, %v677_v41 }
 0x1d5   : > { %v406_v45 = vpop.f32.mrf.mxu1  ;;  %411 = vst [vmem:[%s246_s8] sm:$0xff] %v410_v44 }
 0x1d6   : > { %v409_v46 = vmul.f32 %v679_v43, %v406_v45 }
 0x1d7   : > { %707 = shalt.err (!%p704_p5)
}
 0x1d8   : > { %616 = dma.vmem_to_hbm [thread:$0]  (%p857_p4), %s433_s9, 128, %s435_s10, %s414_s13   ;;  %412 = vst.msk [vmem:[%s253_s11] sm:$0xff] %vm305_vm0, %v409_v46 }
 0x1d9   : > { %s419_s6 = scalar_lea.sflag [#allocation5], %s945_s21  ;;  %s722_s7 = sshra.s32 %s957_s18, 4  ;;  %s723_s7 = int_to_ptr.hbm [resolvable:$true] %s722_s7 }
 0x1da   : > { %s724_s8 = scalar_lea.hbm %s723_s7, 8  ;;  %s728_s24 = scalar_lea.hbm %s1011_s4, 16 }
 0x1db   : > { %p725_p6 = scmp.ne.s32.totalorder %s723_s7, %s724_s8  ;;  %p729_p10 = scmp.lt.s32.totalorder %s723_s7, %s1011_s4 }
 0x1dc   : > { %p730_p11 = scmp.lt.s32.totalorder %s728_s24, %s724_s8 }
 0x1dd   : > { %p726_p7 = pnand %p725_p6, %p857_p4 }
 0x1de   : > { %p731_p12 = por %p730_p11, %p729_p10 }
 0x1df   : > { %p727_p9 = pneg %p726_p7 }
 0x1e1   : > { %p732_p13 = pnand %p731_p12, %p727_p9 }
 0x1e3   : > { %735 = shalt.err (!%p732_p13)
}
 0x1e4   : > { %617 = dma.vmem_to_hbm [thread:$0]  (%p857_p4), %s955_s12, 128, %s957_s18, %s419_s6  }
 0x1e5 PF: > { %p627_p0 = scmp.ge.s32.totalorder %s790_s20, 2  ;;  %s461_s21 = sand.u32 1, %s770_s15  }
 0x1e6   : > { %s462_s9 = scalar_lea.sflag [#allocation3], %s461_s21 }
 0x1e7   : > { %p621_p1 = pnand %p627_p0, %p864_p8 }
 0x1e9   : > { %p622_p2 = pneg %p621_p1 }
 0x1eb   : > { %761 = dma.done.wait (%p622_p2), %s462_s9, 128  }
 0x1ec   : > { %763 = vsyncadd (%p622_p2), %s462_s9, 4294967168  ;;  %s472_s10 = scalar_lea.sflag [#allocation5], %s461_s21 }
 0x1ed   : > { %765 = dma.done.wait (%p622_p2), %s472_s10, 128  }
 0x1ee   : > { %767 = vsyncadd (%p622_p2), %s472_s10, 4294967168  ;;  %s21_s20 = sadd.s32 1, %s790_s20   ;;  %s1014_s15 = smov %s774_s16 }
 0x1ef   : > { %p18_p3 = scmp.ge.s32.totalorder %s21_s20, 4   ;;  %s1015_s16 = smov %s778_s17 }
 0x1f0   : > { %s1016_s17 = smov %s870_s28  ;;  %s1017_s18 = smov %s786_s19 }
 0x1f1   : > { %s1018_s19 = smov %s1020_s23  ;;  %20 = sbr.rel (!%p18_p3) target bundleno = 6 (0x6), region = 90 }
 0x1f6   :  { %478 = vsyncpa [#allocation3], 1 }
 0x1f7   :  { %480 = vsyncpa [#allocation3 + $0x1], 1 }
 0x1f8   :  { %481 = vsyncpa [#allocation5], 1 }
 0x1f9   :  { %483 = vsyncpa [#allocation5 + $0x1], 1 }

</bundles_post_ra>
